<compile_context>
chip_gen: v7x
topology: tpu7x:2x2x1
jax: 0.10.0
libtpu: 0.0.40
codegen_flags: <defaults>
</compile_context>

<pallas_src>
import functools
import math

import jax
import jax.numpy as jnp
from jax.experimental import pallas as pl
from jax.experimental.pallas import tpu as pltpu


def _prob_attention_kernel(*refs, scale, inv_keep, has_drop, has_bias,
                           return_attn):
    it = iter(refs)
    q_ref = next(it)                                  # (G, TQ, D)
    k_ref = next(it)                                  # (G, LK, D)
    v_ref = next(it)                                  # (G, LK, D)
    drop_ref = next(it) if has_drop else None         # (G, TQ, LK) bf16 {0,1}
    bias_ref = next(it) if has_bias else None         # (G, TQ, LK) bf16 bias
    ctx_ref = next(it)                                # (G, TQ, D)
    attn_ref = next(it) if return_attn else None      # (G, TQ, LK)

    q = q_ref[...]
    k = k_ref[...]
    v = v_ref[...]

    # scores = Q @ K^T * scale  -- contract D directly (batched over heads),
    # avoiding an explicit transpose of K before the MXU push.
    scores = jax.lax.dot_general(
        q, k, (((2,), (2,)), ((0,), (0,))),
        preferred_element_type=jnp.float32) * scale

    if has_bias:
        # masked_fill(attn_mask == 0, -inf) expressed as a finite additive
        # bias: exp() underflows masked logits to exactly 0, and fully-masked
        # rows stay finite (uniform) instead of producing NaNs.
        scores = scores + bias_ref[...].astype(jnp.float32)

    # softmax over the key axis
    smax = jnp.max(scores, axis=-1, keepdims=True)
    p = jnp.exp(scores - smax)
    attn = p / jnp.sum(p, axis=-1, keepdims=True)

    # MCDropout (always active in the module): attn * keep / (1 - p_drop)
    if has_drop:
        attn = attn * (drop_ref[...].astype(jnp.float32) * inv_keep)

    # context = attn @ V; cast the LHS to V's dtype so bf16 inputs take the
    # fast bf16 MXU input path while the accumulation stays f32.
    ctx = jax.lax.dot_general(
        attn.astype(v.dtype), v, (((2,), (1,)), ((0,), (0,))),
        preferred_element_type=jnp.float32)

    ctx_ref[...] = ctx.astype(ctx_ref.dtype)
    if return_attn:
        # PyTorch returns the post-dropout attention matrix.
        attn_ref[...] = attn.astype(attn_ref.dtype)


def prob_attention(queries, keys, values, attn_mask=None, *,
                   scale=None, attention_dropout=0.1, rng_key=None,
                   return_attn=True):
    """JAX/Pallas equivalent of ProbAttention.forward.

    queries: (B, H, L_q, D); keys/values: (B, H, L_k, D);
    attn_mask: None or broadcastable to (B, H, L_q, L_k) (0 => masked).
    Returns (context, attn) (attn omitted when return_attn=False).
    """
    queries = jnp.asarray(queries)
    keys = jnp.asarray(keys)
    values = jnp.asarray(values)

    B, H, L_q, D = queries.shape
    L_k = keys.shape[2]
    BH = B * H
    scale_val = float(scale) if scale is not None else 1.0 / math.sqrt(D)

    p_drop = float(attention_dropout)
    has_drop = p_drop > 0.0
    has_bias = attn_mask is not None
    inv_keep = 1.0 / (1.0 - p_drop) if has_drop else 1.0

    q3 = queries.reshape(BH, L_q, D)
    k3 = keys.reshape(BH, L_k, D)
    v3 = values.reshape(BH, L_k, D)

    # Output dtypes follow the input dtypes (bf16 inputs => bf16 attn/ctx
    # writeback, halving the dominant HBM write stream).
    attn_dtype = jnp.result_type(queries.dtype, keys.dtype)
    ctx_dtype = jnp.result_type(attn_dtype, values.dtype)

    # q-tile size: full L_q for short sequences, 128-row tiles otherwise.
    tq = 128 if (L_q > 128 and L_q % 128 == 0) else L_q
    n_q = L_q // tq

    # Batch G heads per grid step (amortizes per-step overhead / small MXU ops
    # at small L) subject to a per-step VMEM budget.
    in_bytes = jnp.dtype(queries.dtype).itemsize
    per_head = (tq * D * in_bytes                       # q tile
                + 2 * L_k * D * in_bytes                # k, v
                + (tq * L_k * 2 if has_drop else 0)     # dropout mask (bf16)
                + (tq * L_k * 2 if has_bias else 0)     # mask bias (bf16)
                + tq * D * jnp.dtype(ctx_dtype).itemsize
                + (tq * L_k * jnp.dtype(attn_dtype).itemsize if return_attn else 0)
                + tq * L_k * 8)                         # f32 scores/attn temps
    budget = 6 * 1024 * 1024                            # double-buffered budget
    g_cap = max(1, min(BH, budget // max(2 * per_head, 1)))
    G = 1
    for g in range(g_cap, 0, -1):
        if BH % g == 0:
            G = g
            break

    grid = (BH // G, n_q)

    inputs = [q3, k3, v3]
    in_specs = [
        pl.BlockSpec((G, tq, D), lambda h, qi: (h, qi, 0)),
        pl.BlockSpec((G, L_k, D), lambda h, qi: (h, 0, 0)),
        pl.BlockSpec((G, L_k, D), lambda h, qi: (h, 0, 0)),
    ]

    if has_drop:
        if rng_key is None:
            rng_key = jax.random.PRNGKey(0)
        # {0,1} keep mask in bf16 (2 B/elem); scaled by 1/(1-p) in-kernel.
        keep = jax.random.bernoulli(rng_key, 1.0 - p_drop, (BH, L_q, L_k))
        inputs.append(keep.astype(jnp.bfloat16))
        in_specs.append(pl.BlockSpec((G, tq, L_k), lambda h, qi: (h, qi, 0)))

    if has_bias:
        mask_b = jnp.broadcast_to(attn_mask, (B, H, L_q, L_k)).reshape(BH, L_q, L_k)
        bias = jnp.where(mask_b == 0, -1e30, 0.0).astype(jnp.bfloat16)
        inputs.append(bias)
        in_specs.append(pl.BlockSpec((G, tq, L_k), lambda h, qi: (h, qi, 0)))

    out_shapes = [jax.ShapeDtypeStruct((BH, L_q, D), ctx_dtype)]
    out_specs = [pl.BlockSpec((G, tq, D), lambda h, qi: (h, qi, 0))]
    if return_attn:
        out_shapes.append(jax.ShapeDtypeStruct((BH, L_q, L_k), attn_dtype))
        out_specs.append(pl.BlockSpec((G, tq, L_k), lambda h, qi: (h, qi, 0)))

    # Explicit VMEM limit with headroom (capped below v7x's 64 MiB physical).
    vmem_limit = int(min(64 * 2**20, max(32 * 2**20, 3 * G * per_head)))

    kernel = functools.partial(
        _prob_attention_kernel, scale=scale_val, inv_keep=inv_keep,
        has_drop=has_drop, has_bias=has_bias, return_attn=return_attn)

    outs = pl.pallas_call(
        kernel,
        grid=grid,
        in_specs=in_specs,
        out_specs=tuple(out_specs) if return_attn else out_specs[0],
        out_shape=tuple(out_shapes) if return_attn else out_shapes[0],
        compiler_params=pltpu.CompilerParams(
            dimension_semantics=("parallel", "parallel"),
            vmem_limit_bytes=vmem_limit),
    )(*inputs)

    # TODO(synk): lane-dense (H*D / padded-L_k) output slabs for D, L_k < 128
    # would further speed up the store path; skipped to keep layout simple.

    if return_attn:
        ctx, attn = outs
        return ctx.reshape(B, H, L_q, D), attn.reshape(B, H, L_q, L_k)
    return outs.reshape(B, H, L_q, D)


if __name__ == "__main__":
    # Small, deterministic example shapes consistent with the module's forward.
    B, H, L_q, L_k, D = 2, 4, 8, 8, 32
    key = jax.random.PRNGKey(0)
    kq, kk, kv, kd = jax.random.split(key, 4)
    queries = jax.random.normal(kq, (B, H, L_q, D), dtype=jnp.float32)
    keys = jax.random.normal(kk, (B, H, L_k, D), dtype=jnp.float32)
    values = jax.random.normal(kv, (B, H, L_k, D), dtype=jnp.float32)

    # 1) Module defaults: no mask, MC-dropout p=0.1 (always active).
    context, attn = prob_attention(queries, keys, values, attn_mask=None,
                                   attention_dropout=0.1, rng_key=kd)
    jax.block_until_ready(context)
    jax.block_until_ready(attn)
    assert context.shape == (B, H, L_q, D)
    assert attn.shape == (B, H, L_q, L_k)
    assert bool(jnp.all(jnp.isfinite(context)))
    assert bool(jnp.all(jnp.isfinite(attn)))

    # 2) No-dropout path vs pure-JAX reference (loose tol: TPU default matmul
    #    precision differs between the kernel and the XLA reference path).
    ctx0, attn0 = prob_attention(queries, keys, values, attn_mask=None,
                                 attention_dropout=0.0)
    sc = 1.0 / math.sqrt(D)
    ref_attn = jax.nn.softmax(
        jnp.einsum("bhqd,bhkd->bhqk", queries, keys) * sc, axis=-1)
    ref_ctx = jnp.einsum("bhqk,bhkd->bhqd", ref_attn, values)
    assert bool(jnp.allclose(ctx0, ref_ctx, rtol=5e-2, atol=5e-2))
    assert bool(jnp.allclose(jnp.sum(attn0, axis=-1), 1.0, atol=1e-2))

    # 3) Masked path: causal mask; masked positions must be (numerically) zero.
    causal = jnp.tril(jnp.ones((L_q, L_k), jnp.int32))[None, None]
    ctx_m, attn_m = prob_attention(queries, keys, values, attn_mask=causal,
                                   attention_dropout=0.1, rng_key=kd)
    jax.block_until_ready(ctx_m)
    mask_b = jnp.broadcast_to(causal, (B, H, L_q, L_k))
    assert bool(jnp.all(jnp.where(mask_b == 0, attn_m <= 1e-6, True)))
    assert bool(jnp.all(jnp.isfinite(ctx_m)))

    print("KERNEL_OK")
</pallas_src>

<mosaic_0001>
module attributes {stable_mosaic.version = 11 : i64} {
  func.func @_prob_attention_kernel(%arg0: i32, %arg1: i32, %arg2: memref<8x8x32xf32, #tpu.memory_space<vmem>>, %arg3: memref<8x8x32xf32, #tpu.memory_space<vmem>>, %arg4: memref<8x8x32xf32, #tpu.memory_space<vmem>>, %arg5: memref<8x8x8xbf16, #tpu.memory_space<vmem>>, %arg6: memref<8x8x32xf32, #tpu.memory_space<vmem>>, %arg7: memref<8x8x8xf32, #tpu.memory_space<vmem>>) attributes {dimension_semantics = [#tpu.dimension_semantics<parallel>, #tpu.dimension_semantics<parallel>], iteration_bounds = array<i64: 1, 1>, scalar_prefetch = 0 : i64, scratch_operands = 0 : i64, tpu.core_type = #tpu.core_type<tc>, window_params = [{transform_indices = @transform_0, window_bounds = array<i64: 8, 8, 32>}, {transform_indices = @transform_1, window_bounds = array<i64: 8, 8, 32>}, {transform_indices = @transform_2, window_bounds = array<i64: 8, 8, 32>}, {transform_indices = @transform_3, window_bounds = array<i64: 8, 8, 8>}, {transform_indices = @transform_4, window_bounds = array<i64: 8, 8, 32>}, {transform_indices = @transform_5, window_bounds = array<i64: 8, 8, 8>}]} {
    %c0 = arith.constant 0 : index
    %c0_0 = arith.constant 0 : index
    %c0_1 = arith.constant 0 : index
    %0 = vector.load %arg2[%c0, %c0_0, %c0_1] : memref<8x8x32xf32, #tpu.memory_space<vmem>>, vector<8x8x32xf32>
    %c0_2 = arith.constant 0 : index
    %c0_3 = arith.constant 0 : index
    %c0_4 = arith.constant 0 : index
    %1 = vector.load %arg3[%c0_2, %c0_3, %c0_4] : memref<8x8x32xf32, #tpu.memory_space<vmem>>, vector<8x8x32xf32>
    %c0_5 = arith.constant 0 : index
    %c0_6 = arith.constant 0 : index
    %c0_7 = arith.constant 0 : index
    %2 = vector.load %arg4[%c0_5, %c0_6, %c0_7] : memref<8x8x32xf32, #tpu.memory_space<vmem>>, vector<8x8x32xf32>
    %cst = arith.constant dense<0.000000e+00> : vector<8x8x8xf32>
    %3 = tpu.matmul %0, %1, %cst {dimension_numbers = #tpu.dot_dimension_numbers<[2], [2], [1], [1], [0, 0, 0, 1, 1, 1], [0], [0]>} : vector<8x8x32xf32>, vector<8x8x32xf32>, vector<8x8x8xf32> -> vector<8x8x8xf32>
    %cst_8 = arith.constant 0.176776692 : f32
    %4 = vector.broadcast %cst_8 : f32 to vector<8x8x8xf32>
    %5 = arith.mulf %3, %4 : vector<8x8x8xf32>
    %cst_9 = arith.constant dense<0xFF800000> : vector<8x8xf32>
    %6 = vector.multi_reduction <maximumf>, %5, %cst_9 [2] : vector<8x8x8xf32> to vector<8x8xf32>
    %7 = vector.shape_cast %6 : vector<8x8xf32> to vector<8x8x1xf32>
    %8 = vector.broadcast %7 : vector<8x8x1xf32> to vector<8x8x8xf32>
    %9 = arith.subf %5, %8 : vector<8x8x8xf32>
    %10 = math.exp %9 : vector<8x8x8xf32>
    %cst_10 = arith.constant dense<0.000000e+00> : vector<8x8xf32>
    %11 = vector.multi_reduction <add>, %10, %cst_10 [2] : vector<8x8x8xf32> to vector<8x8xf32>
    %12 = vector.shape_cast %11 : vector<8x8xf32> to vector<8x8x1xf32>
    %13 = vector.broadcast %12 : vector<8x8x1xf32> to vector<8x8x8xf32>
    %14 = arith.divf %10, %13 : vector<8x8x8xf32>
    %c0_11 = arith.constant 0 : index
    %c0_12 = arith.constant 0 : index
    %c0_13 = arith.constant 0 : index
    %15 = vector.load %arg5[%c0_11, %c0_12, %c0_13] : memref<8x8x8xbf16, #tpu.memory_space<vmem>>, vector<8x8x8xbf16>
    %16 = arith.extf %15 : vector<8x8x8xbf16> to vector<8x8x8xf32>
    %cst_14 = arith.constant 1.11111116 : f32
    %17 = vector.broadcast %cst_14 : f32 to vector<8x8x8xf32>
    %18 = arith.mulf %16, %17 : vector<8x8x8xf32>
    %19 = arith.mulf %14, %18 : vector<8x8x8xf32>
    %cst_15 = arith.constant dense<0.000000e+00> : vector<8x8x32xf32>
    %20 = tpu.matmul %19, %2, %cst_15 {dimension_numbers = #tpu.dot_dimension_numbers<[2], [1], [1], [2], [0, 0, 0, 1, 1, 2], [0], [0]>} : vector<8x8x8xf32>, vector<8x8x32xf32>, vector<8x8x32xf32> -> vector<8x8x32xf32>
    %c0_16 = arith.constant 0 : index
    %c0_17 = arith.constant 0 : index
    %c0_18 = arith.constant 0 : index
    %21 = vector.load %arg6[%c0_16, %c0_17, %c0_18] : memref<8x8x32xf32, #tpu.memory_space<vmem>>, vector<8x8x32xf32>
    tpu.vector_store %arg6[%c0_16, %c0_17, %c0_18], %20 {strides = array<i32>} : memref<8x8x32xf32, #tpu.memory_space<vmem>>, vector<8x8x32xf32>,
    %c0_19 = arith.constant 0 : index
    %c0_20 = arith.constant 0 : index
    %c0_21 = arith.constant 0 : index
    %22 = vector.load %arg7[%c0_19, %c0_20, %c0_21] : memref<8x8x8xf32, #tpu.memory_space<vmem>>, vector<8x8x8xf32>
    tpu.vector_store %arg7[%c0_19, %c0_20, %c0_21], %19 {strides = array<i32>} : memref<8x8x8xf32, #tpu.memory_space<vmem>>, vector<8x8x8xf32>,
    return
  }
  func.func @transform_0(%arg0: i32, %arg1: i32) -> (i32, i32, i32) {
    %c0_i32 = arith.constant 0 : i32
    %c0_i32_0 = arith.constant 0 : i32
    return %arg0, %arg1, %c0_i32 : i32, i32, i32
  }
  func.func @transform_1(%arg0: i32, %arg1: i32) -> (i32, i32, i32) {
    %c0_i32 = arith.constant 0 : i32
    %c0_i32_0 = arith.constant 0 : i32
    %c0_i32_1 = arith.constant 0 : i32
    return %arg0, %c0_i32, %c0_i32_0 : i32, i32, i32
  }
  func.func @transform_2(%arg0: i32, %arg1: i32) -> (i32, i32, i32) {
    %c0_i32 = arith.constant 0 : i32
    %c0_i32_0 = arith.constant 0 : i32
    %c0_i32_1 = arith.constant 0 : i32
    return %arg0, %c0_i32, %c0_i32_0 : i32, i32, i32
  }
  func.func @transform_3(%arg0: i32, %arg1: i32) -> (i32, i32, i32) {
    %c0_i32 = arith.constant 0 : i32
    %c0_i32_0 = arith.constant 0 : i32
    return %arg0, %arg1, %c0_i32 : i32, i32, i32
  }
  func.func @transform_4(%arg0: i32, %arg1: i32) -> (i32, i32, i32) {
    %c0_i32 = arith.constant 0 : i32
    %c0_i32_0 = arith.constant 0 : i32
    return %arg0, %arg1, %c0_i32 : i32, i32, i32
  }
  func.func @transform_5(%arg0: i32, %arg1: i32) -> (i32, i32, i32) {
    %c0_i32 = arith.constant 0 : i32
    %c0_i32_0 = arith.constant 0 : i32
    return %arg0, %arg1, %c0_i32 : i32, i32, i32
  }
}

</mosaic_0001>

<bundles_post_ra>
// kernel: tpu_custom_call.1
= control target key start
LH: loop header
LB: loop body
LE: loop exit
PB: predicated region body
PF: predicated region fallthrough
CT: control target
= control target key end

     0   :  { %11 = vsyncpa [#allocation3], 0  ;;  %s2085_s0 = inlined_call_operand.hbm [shape: f32[8,8,32], index: 0, kind: input, shape index: {}]   ;;  %s2086_s1 = inlined_call_operand.hbm [shape: f32[8,8,32], index: 1, kind: input, shape index: {}]   ;;  %s2087_s2 = inlined_call_operand.hbm [shape: f32[8,8,32], index: 2, kind: input, shape index: {}]   ;;  %s2088_s3 = inlined_call_operand.hbm [shape: bf16[8,8,8], index: 3, kind: input, shape index: {}]   ;;  %s2089_s4 = inlined_call_operand.hbm [shape: f32[8,8,32], index: 4, kind: output, shape index: {0}]   ;;  %s2090_s5 = inlined_call_operand.hbm [shape: f32[8,8,8], index: 5, kind: output, shape index: {1}]  }
   0x1   :  { %12 = vsyncpa [#allocation6], 0 }
   0x2   :  { %13 = vsyncpa [#allocation9], 0 }
   0x3   :  { %14 = vsyncpa [#allocation4], 0 }
   0x4   :  { %15 = vsyncpa [#allocation12], 0  ;;  %s1814_s18 = smov [#allocation5]   ;;  %s1815_s20 = smov [#allocation2]  }
   0x5   :  { %s33_s19 = sshll.u32 %s1814_s18, 4  ;;  %s21_s21 = sshll.u32 %s1815_s20, 4  ;;  %s34_s19 = int_to_ptr.vmem [resolvable:$true] %s33_s19  ;;  %s1856_s21 = int_to_ptr.vmem [resolvable:$true] %s21_s21 }
   0x6   :  { %s1672_s24 = scalar_lea.hbm %s2086_s1, 1024 }
   0x7   :  { %p1673_p0 = scmp.ne.s32.totalorder %s2086_s1, %s1672_s24  ;;  %p1676_p1 = scmp.lt.u32.totalorder %s1672_s24, %s2086_s1 }
   0x9   :  { %p1678_p2 = pnand %p1676_p1, %p1673_p0 }
   0xb   :  { %1681 = shalt.err (!%p1678_p2)
}
   0xc   :  { %s1682_s29 = scalar_lea.vmem %s34_s19, 1024  ;;  %p1687_p4 = scmp.lt.s32.totalorder %s34_s19, %s34_s19 }
   0xd   :  { %p1683_p3 = scmp.ne.s32.totalorder %s34_s19, %s1682_s29  ;;  %p1688_p5 = scmp.lt.s32.totalorder %s1682_s29, %s1682_s29 }
   0xf   :  { %p1689_p6 = por %p1688_p5, %p1687_p4 }
  0x11   :  { %p1690_p7 = pnand %p1689_p6, %p1683_p3 }
  0x13   :  { %1693 = shalt.err (!%p1690_p7)
}
  0x14   :  { %s1816_s30 = smov 128   ;;  %s1817_s6 = smov 8  }
  0x15   :  { %39 = dma.hbm_to_vmem [thread:$0]  %s2086_s1, 1024, %s34_s19, [#allocation6], %s1816_s30, %s1816_s30, %s1817_s6  }
  0x16   :  { %s1694_s11 = scalar_lea.hbm %s2085_s0, 1024 }
  0x17   :  { %p1695_p8 = scmp.ne.s32.totalorder %s2085_s0, %s1694_s11  ;;  %p1698_p9 = scmp.lt.u32.totalorder %s1694_s11, %s2085_s0 }
  0x19   :  { %p1700_p10 = pnand %p1698_p9, %p1695_p8 }
  0x1b   :  { %1703 = shalt.err (!%p1700_p10)
}
  0x1c   :  { %s1704_s16 = scalar_lea.vmem %s1856_s21, 1024  ;;  %p1709_p12 = scmp.lt.s32.totalorder %s1856_s21, %s1856_s21 }
  0x1d   :  { %p1705_p11 = scmp.ne.s32.totalorder %s1856_s21, %s1704_s16  ;;  %p1710_p13 = scmp.lt.s32.totalorder %s1704_s16, %s1704_s16 }
  0x1f   :  { %p1711_p0 = por %p1710_p13, %p1709_p12 }
  0x21   :  { %p1712_p1 = pnand %p1711_p0, %p1705_p11 }
  0x23   :  { %1715 = shalt.err (!%p1712_p1)
}
  0x24   :  { %27 = dma.hbm_to_vmem [thread:$0]  %s2085_s0, 1024, %s1856_s21, [#allocation3], %s1816_s30, %s1816_s30, %s1817_s6  }
  0x25   :  { %s1818_s18 = smov [#allocation7]   ;;  %s1819_s20 = smov [#allocation8]  }
  0x26   :  { %s45_s19 = sshll.u32 %s1818_s18, 4  ;;  %s57_s22 = sshll.u32 %s1819_s20, 4  ;;  %s46_s19 = int_to_ptr.vmem [resolvable:$true] %s45_s19  ;;  %s1893_s22 = int_to_ptr.vmem [resolvable:$true] %s57_s22 }
  0x27   :  { %s1716_s25 = scalar_lea.hbm %s2087_s2, 1024 }
  0x28   :  { %p1717_p2 = scmp.ne.s32.totalorder %s2087_s2, %s1716_s25  ;;  %p1720_p3 = scmp.lt.u32.totalorder %s1716_s25, %s2087_s2 }
  0x2a   :  { %p1722_p4 = pnand %p1720_p3, %p1717_p2 }
  0x2c   :  { %1725 = shalt.err (!%p1722_p4)
}
  0x2d   :  { %s1726_s0 = scalar_lea.vmem %s46_s19, 1024  ;;  %p1731_p6 = scmp.lt.s32.totalorder %s46_s19, %s46_s19 }
  0x2e   :  { %p1727_p5 = scmp.ne.s32.totalorder %s46_s19, %s1726_s0  ;;  %p1732_p7 = scmp.lt.s32.totalorder %s1726_s0, %s1726_s0 }
  0x30   :  { %p1733_p8 = por %p1732_p7, %p1731_p6 }
  0x32   :  { %p1734_p9 = pnand %p1733_p8, %p1727_p5 }
  0x34   :  { %1737 = shalt.err (!%p1734_p9)
}
  0x35   :  { %51 = dma.hbm_to_vmem [thread:$0]  %s2087_s2, 1024, %s46_s19, [#allocation6], %s1816_s30, %s1816_s30, %s1817_s6  }
  0x36   :  { %s1738_s10 = scalar_lea.hbm %s2088_s3, 512 }
  0x37   :  { %p1739_p10 = scmp.ne.s32.totalorder %s2088_s3, %s1738_s10  ;;  %p1742_p11 = scmp.lt.u32.totalorder %s1738_s10, %s2088_s3 }
  0x39   :  { %p1744_p12 = pnand %p1742_p11, %p1739_p10 }
  0x3b   :  { %1747 = shalt.err (!%p1744_p12)
}
  0x3c   :  { %s1748_s15 = scalar_lea.vmem %s1893_s22, 512  ;;  %p1753_p0 = scmp.lt.s32.totalorder %s1893_s22, %s1893_s22 }
  0x3d   :  { %p1749_p13 = scmp.ne.s32.totalorder %s1893_s22, %s1748_s15  ;;  %p1754_p1 = scmp.lt.s32.totalorder %s1748_s15, %s1748_s15 }
  0x3f   :  { %p1755_p2 = por %p1754_p1, %p1753_p0 }
  0x41   :  { %p1756_p3 = pnand %p1755_p2, %p1749_p13 }
  0x43   :  { %1759 = shalt.err (!%p1756_p3)
}
  0x44   :  { %s1820_s2 = smov 64   ;;  %s1821_s16 = smov 4  }
  0x45   :  { %63 = dma.hbm_to_vmem [thread:$0]  %s2088_s3, 512, %s1893_s22, [#allocation9], %s1820_s2, %s1820_s2, %s1821_s16  }
  0x46   :  { %1804 = dma.done.wait [#allocation3], 1024  }
  0x47   :  { %1805 = vsyncadd [#allocation3], 4294966272 }
  0x48   :  { %1806 = dma.done.wait [#allocation6], 2048  }
  0x49   :  { %1807 = vsyncadd [#allocation6], 4294965248 }
  0x4a   :  { %1808 = dma.done.wait [#allocation9], 512  }
  0x4b   :  { %1809 = vsyncadd [#allocation9], 4294966784  ;;  %v1822_v0 = vmov 0.0   ;;  %vm1823_vm0 = vmmov 0   ;;  %vm100_vm1 = vcmask 261120   ;;  %v84_v1 = vld [vmem:[#allocation5] sm:$0xff] }
  0x4c   :  { %1548 = vmatprep.subr.mxu0 %v1822_v0  ;;  %1550 = vmatprep.mubr.msk.f32.mxu0 %vm1823_vm0, %v1822_v0  ;;  %v85_v2 = vld [vmem:[#allocation5 + $0x8] sm:$0xff]  ;;  %v76_v3 = vld [vmem:[#allocation2] sm:$0xff]  ;;  %v86_v5 = vld [vmem:[#allocation5 + $0x10] sm:$0xff]  ;;  %vm717_vm2 = vcmask 64512   ;;  %s1824_s3 = smov [#allocation11]  }
  0x4d   :  { %1553 = vmatprep.subr.mxu1 %v1822_v0  ;;  %1555 = vmatprep.mubr.msk.f32.mxu1 %vm1823_vm0, %v1822_v0  ;;  %v77_v4 = vld [vmem:[#allocation2 + $0x8] sm:$0xff]  ;;  %v87_v6 = vld [vmem:[#allocation5 + $0x18] sm:$0xff]  ;;  %v78_v7 = vld [vmem:[#allocation2 + $0x10] sm:$0xff]  ;;  %s1455_s18 = sshll.u32 %s1824_s3, 4  ;;  %s1456_s18 = int_to_ptr.vmem [resolvable:$true] %s1455_s18 }
  0x4e   :  { %1549 = vmatpush3.xpose.msk.msra.mxu0 %vm100_vm1, %v84_v1  ;;  %1554 = vmatpush3.xpose.msk.msra.mxu1 %vm100_vm1, %v85_v2  ;;  %v88_v8 = vld [vmem:[#allocation5 + $0x20] sm:$0xff]  ;;  %v79_v9 = vld [vmem:[#allocation2 + $0x18] sm:$0xff]  ;;  %v89_v10 = vld [vmem:[#allocation5 + $0x28] sm:$0xff]  ;;  %s1760_s19 = scalar_lea.vmem %s1456_s18, 1024  ;;  %p1765_p5 = scmp.lt.s32.totalorder %s1456_s18, %s1456_s18 }
  0x4f   :  { %1558 = vmatprep.subr.mxu0 %v1822_v0  ;;  %1563 = vmatprep.subr.mxu1 %v1822_v0  ;;  %v80_v11 = vld [vmem:[#allocation2 + $0x20] sm:$0xff]  ;;  %v90_v12 = vld [vmem:[#allocation5 + $0x30] sm:$0xff]  ;;  %v81_v13 = vld [vmem:[#allocation2 + $0x28] sm:$0xff]  ;;  %p1761_p4 = scmp.ne.s32.totalorder %s1456_s18, %s1760_s19  ;;  %p1766_p6 = scmp.lt.s32.totalorder %s1760_s19, %s1760_s19 }
  0x50   :  { %v91_v14 = vld [vmem:[#allocation5 + $0x38] sm:$0xff]  ;;  %v82_v15 = vld [vmem:[#allocation2 + $0x30] sm:$0xff] }
  0x51   :  { %1551 = vmatmul.mubr.msk.f32.vlgmr.msra.gmra.mrb[0].mxu0 %vm100_vm1, %v76_v3  ;;  %1556 = vmatmul.mubr.msk.f32.vlgmr.msra.gmra.mrb[0].mxu1 %vm100_vm1, %v77_v4  ;;  %v83_v16 = vld [vmem:[#allocation2 + $0x38] sm:$0xff]  ;;  %p1767_p7 = por %p1766_p6, %p1765_p5 }
  0x52   :  { %1559 = vmatpush3.xpose.msk.msra.mxu0 %vm100_vm1, %v86_v5  ;;  %1560 = vmatprep.mubr.msk.f32.mxu0 %vm1823_vm0, %v1822_v0 }
  0x53   :  { %1568 = vmatprep.subr.mxu0 %v1822_v0  ;;  %1564 = vmatpush3.xpose.msk.msra.mxu1 %vm100_vm1, %v87_v6  ;;  %p1768_p8 = pnand %p1767_p7, %p1761_p4 }
  0x54   :  { %1565 = vmatprep.mubr.msk.f32.mxu1 %vm1823_vm0, %v1822_v0  ;;  %1573 = vmatprep.subr.mxu1 %v1822_v0 }
  0x55   :  { %1561 = vmatmul.mubr.msk.f32.vlgmr.msra.gmra.mrb[2].mxu0 %vm100_vm1, %v78_v7 }
  0x56   :  { %1569 = vmatpush3.xpose.msk.msra.mxu0 %vm100_vm1, %v88_v8  ;;  %1570 = vmatprep.mubr.msk.f32.mxu0 %vm1823_vm0, %v1822_v0 }
  0x57   :  { %1566 = vmatmul.mubr.msk.f32.vlgmr.msra.gmra.mrb[2].mxu1 %vm100_vm1, %v79_v9  ;;  %1578 = vmatprep.subr.mxu0 %v1822_v0 }
  0x58   :  { %1574 = vmatpush3.xpose.msk.msra.mxu1 %vm100_vm1, %v89_v10  ;;  %1575 = vmatprep.mubr.msk.f32.mxu1 %vm1823_vm0, %v1822_v0 }
  0x59   :  { %1571 = vmatmul.mubr.msk.f32.vlgmr.msra.gmra.mrb[4].mxu0 %vm100_vm1, %v80_v11  ;;  %1583 = vmatprep.subr.mxu1 %v1822_v0 }
  0x5a   :  { %1579 = vmatpush3.xpose.msk.msra.mxu0 %vm100_vm1, %v90_v12  ;;  %1580 = vmatprep.mubr.msk.f32.mxu0 %vm1823_vm0, %v1822_v0 }
  0x5b   :  { %1576 = vmatmul.mubr.msk.f32.vlgmr.msra.gmra.mrb[4].mxu1 %vm100_vm1, %v81_v13  ;;  %1588 = vmatprep.subr.mxu0 %v1822_v0 }
  0x5c   :  { %1584 = vmatpush3.xpose.msk.msra.mxu1 %vm100_vm1, %v91_v14  ;;  %1585 = vmatprep.mubr.msk.f32.mxu1 %vm1823_vm0, %v1822_v0 }
  0x5d   :  { %1581 = vmatmul.mubr.msk.f32.vlgmr.msra.gmra.mrb[6].mxu0 %vm100_vm1, %v82_v15  ;;  %1593 = vmatprep.subr.mxu1 %v1822_v0 }
  0x5e   :  { %1590 = vmatprep.mubr.msk.f32.mxu0 %vm1823_vm0, %v1822_v0 }
  0x5f   :  { %1586 = vmatmul.mubr.msk.f32.vlgmr.msra.gmra.mrb[6].mxu1 %vm100_vm1, %v83_v16 }
  0x60   :  { %1595 = vmatprep.mubr.msk.f32.mxu1 %vm1823_vm0, %v1822_v0 }
 0x124   :  { %v173_v17 = vpop.f32.mrb[0].mxu0  ;;  %v249_v18 = vpop.f32.mrb[0].mxu1 }
 0x125   :  { %v709_v19 = vmul.f32 0.17677669, %v173_v17  ;;  %v1552_v20 = vpop.f32.mrb[1].mxu0  ;;  %v710_v21 = vmul.f32 0.17677669, %v249_v18  ;;  %v1557_v22 = vpop.f32.mrb[1].mxu1 }
 0x127   :  { %v718_v23 = vsel %vm717_vm2, %v709_v19, -inf  ;;  %v721_v27 = vsel %vm717_vm2, %v710_v21, -inf }
 0x128   :  { %719 = vmax.xlane.f32.xlu0 %v718_v23  ;;  %v325_v24 = vpop.f32.mrb[2].mxu0 }
 0x129   :  { %v711_v25 = vmul.f32 0.17677669, %v325_v24  ;;  %v1562_v26 = vpop.f32.mrb[3].mxu0 }
 0x12a   :  { %v401_v28 = vpop.f32.mrb[2].mxu1  ;;  %v92_v26 = vld [vmem:[#allocation7] sm:$0xff] }
 0x12b   :  { %v712_v29 = vmul.f32 0.17677669, %v401_v28  ;;  %v724_v30 = vsel %vm717_vm2, %v711_v25, -inf  ;;  %v1567_v31 = vpop.f32.mrb[3].mxu1  ;;  %1589 = vmatpush3.msra.mxu0 %v92_v26 }
 0x12c   :  { %722 = vmax.xlane.f32.xlu0 %v721_v27  ;;  %725 = vmax.xlane.f32.xlu1 %v724_v30  ;;  %v477_v32 = vpop.f32.mrb[4].mxu0  ;;  %v93_v27 = vld [vmem:[#allocation7 + $0x8] sm:$0xff] }
 0x12d   :  { %v713_v33 = vmul.f32 0.17677669, %v477_v32  ;;  %v1572_v34 = vpop.f32.mrb[5].mxu0  ;;  %v727_v35 = vsel %vm717_vm2, %v712_v29, -inf  ;;  %1598 = vmatprep.subr.mxu0 %v1822_v0  ;;  %1594 = vmatpush3.msra.mxu1 %v93_v27 }
 0x12e   :  { %v553_v36 = vpop.f32.mrb[4].mxu1  ;;  %1603 = vmatprep.subr.mxu1 %v1822_v0  ;;  %v1513_v34 = vld [vmem:[#allocation8 + $0x8] sm:$0xff]  }
 0x12f   :  { %v714_v37 = vmul.f32 0.17677669, %v553_v36  ;;  %v730_v38 = vsel %vm717_vm2, %v713_v33, -inf  ;;  %v1577_v39 = vpop.f32.mrb[5].mxu1 }
 0x130   :  { %728 = vmax.xlane.f32.xlu1 %v727_v35  ;;  %731 = vmax.xlane.f32.xlu0 %v730_v38  ;;  %v629_v40 = vpop.f32.mrb[6].mxu0  ;;  %v1503_v39 = vunpack.c.l.bf16 %v1513_v34 }
 0x131   :  { %v715_v41 = vmul.f32 0.17677669, %v629_v40  ;;  %v733_v42 = vsel %vm717_vm2, %v714_v37, -inf  ;;  %v1582_v43 = vpop.f32.mrb[7].mxu0 }
 0x132   :  { %v705_v44 = vpop.f32.mrb[6].mxu1 }
 0x133   :  { %v716_v45 = vmul.f32 0.17677669, %v705_v44  ;;  %v736_v46 = vsel %vm717_vm2, %v715_v41, -inf  ;;  %v1587_v47 = vpop.f32.mrb[7].mxu1 }
 0x134   :  { %734 = vmax.xlane.f32.xlu1 %v733_v42  ;;  %737 = vmax.xlane.f32.xlu0 %v736_v46  ;;  %v1514_v42 = vld [vmem:[#allocation8 + $0x10] sm:$0xff]   ;;  %v1504_v47 = vunpack.c.h.bf16 %v1513_v34 }
 0x135   :  { %v739_v48 = vsel %vm717_vm2, %v716_v45, -inf }
 0x138   :  { %740 = vmax.xlane.f32.xlu1 %v739_v48 }
 0x1b5   :  { %v720_v49 = vpop.xlane.xlu0 %719 }
 0x1b6   :  { %v742_v50 = vsub.f32 %v709_v19, %v720_v49  ;;  %v824_v49 = vmul.f32 1.1111112, %v1503_v39 }
 0x1b8   :  { %v750_v51 = vmul.f32 1.442695, %v742_v50  ;;  %v1507_v50 = vunpack.c.l.bf16 %v1514_v42 }
 0x1b9   :  { %v723_v52 = vpop.xlane.xlu0 %722  ;;  %v726_v53 = vpop.xlane.xlu1 %725 }
 0x1ba   :  { %1640 = vpow2.f32 %v750_v51  ;;  %v743_v54 = vsub.f32 %v710_v21, %v723_v52  ;;  %v744_v55 = vsub.f32 %v711_v25, %v726_v53 }
 0x1bc   :  { %v752_v56 = vmul.f32 1.442695, %v743_v54  ;;  %v754_v57 = vmul.f32 1.442695, %v744_v55  ;;  %v1515_v54 = vld [vmem:[#allocation8 + $0x18] sm:$0xff]  }
 0x1bd   :  { %v729_v58 = vpop.xlane.xlu1 %728  ;;  %v732_v59 = vpop.xlane.xlu0 %731 }
 0x1be   :  { %1642 = vpow2.f32 %v752_v56  ;;  %v745_v60 = vsub.f32 %v712_v29, %v729_v58  ;;  %v746_v61 = vsub.f32 %v713_v33, %v732_v59  ;;  %v1498_v29 = vld [vmem:[#allocation8] sm:$0xff]   ;;  %v825_v58 = vmul.f32 1.1111112, %v1504_v47 }
 0x1bf   :  { %1644 = vpow2.f32 %v754_v57  ;;  %v1499_v32 = vunpack.c.l.bf16 %v1498_v29  ;;  %v95_v57 = vld [vmem:[#allocation7 + $0x18] sm:$0xff]  ;;  %v1508_v59 = vunpack.c.h.bf16 %v1514_v42 }
 0x1c0   :  { %v756_v62 = vmul.f32 1.442695, %v745_v60  ;;  %v758_v63 = vmul.f32 1.442695, %v746_v61 }
 0x1c1   :  { %v735_v1 = vpop.xlane.xlu1 %734  ;;  %v738_v2 = vpop.xlane.xlu0 %737  ;;  %v822_v36 = vmul.f32 1.1111112, %v1499_v32 }
 0x1c2   :  { %1646 = vpow2.f32 %v756_v62  ;;  %v747_v3 = vsub.f32 %v714_v37, %v735_v1  ;;  %v748_v4 = vsub.f32 %v715_v41, %v738_v2  ;;  %v1500_v37 = vunpack.c.h.bf16 %v1498_v29  ;;  %v96_v62 = vld [vmem:[#allocation7 + $0x20] sm:$0xff] }
 0x1c3   :  { %1648 = vpow2.f32 %v758_v63  ;;  %v826_v63 = vmul.f32 1.1111112, %v1507_v50  ;;  %v1511_v1 = vunpack.c.l.bf16 %v1515_v54 }
 0x1c4   :  { %v1641_v5 = vpop.eup %1640  ;;  %v760_v6 = vmul.f32 1.442695, %v747_v3  ;;  %v762_v7 = vmul.f32 1.442695, %v748_v4  ;;  %v823_v46 = vmul.f32 1.1111112, %v1500_v37 }
 0x1c5   :  { %v741_v8 = vpop.xlane.xlu1 %740  ;;  %v766_v9 = vsel %vm717_vm2, %v1641_v5, 0.0 }
 0x1c6   :  { %1650 = vpow2.f32 %v760_v6  ;;  %v749_v10 = vsub.f32 %v716_v45, %v741_v8  ;;  %767 = vadd.xlane.f32.xlu0 %v766_v9  ;;  %v94_v45 = vld [vmem:[#allocation7 + $0x10] sm:$0xff]  ;;  %v97_v6 = vld [vmem:[#allocation7 + $0x28] sm:$0xff]  ;;  %v1512_v8 = vunpack.c.h.bf16 %v1515_v54 }
 0x1c7   :  { %1652 = vpow2.f32 %v762_v7  ;;  %v827_v7 = vmul.f32 1.1111112, %v1508_v59 }
 0x1c8   :  { %v1643_v11 = vpop.eup %1642  ;;  %v764_v12 = vmul.f32 1.442695, %v749_v10 }
 0x1c9   :  { %v1982_v13 = vpop.eup %1644  ;;  %v769_v14 = vsel %vm717_vm2, %v1643_v11, 0.0 }
 0x1ca   :  { %1654 = vpow2.f32 %v764_v12  ;;  %770 = vadd.xlane.f32.xlu1 %v769_v14  ;;  %v772_v15 = vsel %vm717_vm2, %v1982_v13, 0.0  ;;  %v828_v12 = vmul.f32 1.1111112, %v1511_v1 }
 0x1cb   :  { %773 = vadd.xlane.f32.xlu0 %v772_v15 }
 0x1cc   :  { %v1987_v16 = vpop.eup %1646 }
 0x1cd   :  { %v1989_v17 = vpop.eup %1648  ;;  %v775_v18 = vsel %vm717_vm2, %v1987_v16, 0.0 }
 0x1ce   :  { %776 = vadd.xlane.f32.xlu1 %v775_v18  ;;  %v778_v19 = vsel %vm717_vm2, %v1989_v17, 0.0  ;;  %v829_v18 = vmul.f32 1.1111112, %v1512_v8 }
 0x1cf   :  { %779 = vadd.xlane.f32.xlu0 %v778_v19 }
 0x1d0   :  { %v1995_v20 = vpop.eup %1650 }
 0x1d1   :  { %v1997_v21 = vpop.eup %1652  ;;  %v781_v22 = vsel %vm717_vm2, %v1995_v20, 0.0 }
 0x1d2   :  { %782 = vadd.xlane.f32.xlu1 %v781_v22  ;;  %v784_v23 = vsel %vm717_vm2, %v1997_v21, 0.0 }
 0x1d3   :  { %785 = vadd.xlane.f32.xlu0 %v784_v23 }
 0x1d4   :  { %v2003_v24 = vpop.eup %1654 }
 0x1d5   :  { %v787_v25 = vsel %vm717_vm2, %v2003_v24, 0.0 }
 0x1d6   :  { %788 = vadd.xlane.f32.xlu1 %v787_v25 }
 0x253   :  { %v768_v28 = vpop.xlane.xlu0 %767 }
 0x254   :  { %1656 = vrcp.f32 %v768_v28 }
 0x257   :  { %v771_v30 = vpop.xlane.xlu1 %770 }
 0x258   :  { %1658 = vrcp.f32 %v771_v30  ;;  %v774_v31 = vpop.xlane.xlu0 %773 }
 0x259   :  { %1660 = vrcp.f32 %v774_v31 }
 0x25b   :  { %v777_v33 = vpop.xlane.xlu1 %776 }
 0x25c   :  { %1662 = vrcp.f32 %v777_v33  ;;  %v780_v35 = vpop.xlane.xlu0 %779 }
 0x25d   :  { %1664 = vrcp.f32 %v780_v35 }
 0x25e   :  { %v1657_v38 = vpop.eup %1656 }
 0x25f   :  { %v791_v40 = vmul.f32 %v1657_v38, %v1641_v5  ;;  %v783_v41 = vpop.xlane.xlu1 %782 }
 0x260   :  { %1666 = vrcp.f32 %v783_v41  ;;  %v786_v43 = vpop.xlane.xlu0 %785 }
 0x261   :  { %1668 = vrcp.f32 %v786_v43  ;;  %v830_v44 = vmul.f32 %v822_v36, %v791_v40 }
 0x262   :  { %v1659_v48 = vpop.eup %1658 }
 0x263   :  { %v1661_v51 = vpop.eup %1660  ;;  %v793_v52 = vmul.f32 %v1659_v48, %v1643_v11  ;;  %v789_v53 = vpop.xlane.xlu1 %788  ;;  %1591 = vmatmul.mubr.msk.f32.vlgmr.msra.gmra.mrb[8].mxu0 %vm717_vm2, %v830_v44  ;;  %1430 = vst.msk [vmem:[#allocation11] sm:$0xff] %vm717_vm2, %v830_v44  ;;  %v98_v11 = vld [vmem:[#allocation7 + $0x30] sm:$0xff] }
 0x264   :  { %v795_v55 = vmul.f32 %v1661_v51, %v1982_v13  ;;  %1670 = vrcp.f32 %v789_v53  ;;  %1599 = vmatpush3.msra.mxu0 %v94_v45  ;;  %1600 = vmatprep.mubr.msk.f32.mxu0 %vm1823_vm0, %v1822_v0 }
 0x265   :  { %v831_v56 = vmul.f32 %v823_v46, %v793_v52  ;;  %1608 = vmatprep.subr.mxu0 %v1822_v0 }
 0x266   :  { %v1663_v60 = vpop.eup %1662  ;;  %v832_v61 = vmul.f32 %v824_v49, %v795_v55 }
 0x267   :  { %v1665_v2 = vpop.eup %1664  ;;  %v797_v3 = vmul.f32 %v1663_v60, %v1987_v16  ;;  %1596 = vmatmul.mubr.msk.f32.vlgmr.msra.gmra.mrb[8].mxu1 %vm717_vm2, %v831_v56  ;;  %1431 = vst.msk [vmem:[#allocation11 + $0x8] sm:$0xff] %vm717_vm2, %v831_v56 }
 0x268   :  { %v799_v4 = vmul.f32 %v1665_v2, %v1989_v17  ;;  %1601 = vmatmul.mubr.msk.f32.vlgmr.msra.gmra.mrb[10].mxu0 %vm717_vm2, %v832_v61  ;;  %1432 = vst.msk [vmem:[#allocation11 + $0x10] sm:$0xff] %vm717_vm2, %v832_v61  ;;  %1604 = vmatpush3.msra.mxu1 %v95_v57  ;;  %v99_v17 = vld [vmem:[#allocation7 + $0x38] sm:$0xff] }
 0x269   :  { %1605 = vmatprep.mubr.msk.f32.mxu1 %vm1823_vm0, %v1822_v0  ;;  %1609 = vmatpush3.msra.mxu0 %v96_v62  ;;  %v833_v5 = vmul.f32 %v825_v58, %v797_v3 }
 0x26a   :  { %v1667_v9 = vpop.eup %1666  ;;  %1610 = vmatprep.mubr.msk.f32.mxu0 %vm1823_vm0, %v1822_v0  ;;  %v834_v10 = vmul.f32 %v826_v63, %v799_v4  ;;  %1613 = vmatprep.subr.mxu1 %v1822_v0 }
 0x26b   :  { %v1669_v13 = vpop.eup %1668  ;;  %v801_v14 = vmul.f32 %v1667_v9, %v1995_v20  ;;  %1606 = vmatmul.mubr.msk.f32.vlgmr.msra.gmra.mrb[10].mxu1 %vm717_vm2, %v833_v5  ;;  %1433 = vst.msk [vmem:[#allocation11 + $0x18] sm:$0xff] %vm717_vm2, %v833_v5  ;;  %1618 = vmatprep.subr.mxu0 %v1822_v0 }
 0x26c   :  { %v803_v15 = vmul.f32 %v1669_v13, %v1997_v21  ;;  %1611 = vmatmul.mubr.msk.f32.vlgmr.msra.gmra.mrb[12].mxu0 %vm717_vm2, %v834_v10  ;;  %1434 = vst.msk [vmem:[#allocation11 + $0x20] sm:$0xff] %vm717_vm2, %v834_v10  ;;  %1614 = vmatpush3.msra.mxu1 %v97_v6 }
 0x26d   :  { %1615 = vmatprep.mubr.msk.f32.mxu1 %vm1823_vm0, %v1822_v0  ;;  %1619 = vmatpush3.msra.mxu0 %v98_v11  ;;  %v835_v16 = vmul.f32 %v827_v7, %v801_v14 }
 0x26e   :  { %v1671_v19 = vpop.eup %1670  ;;  %1620 = vmatprep.mubr.msk.f32.mxu0 %vm1823_vm0, %v1822_v0  ;;  %v836_v20 = vmul.f32 %v828_v12, %v803_v15  ;;  %1623 = vmatprep.subr.mxu1 %v1822_v0 }
 0x26f   :  { %v805_v21 = vmul.f32 %v1671_v19, %v2003_v24  ;;  %1616 = vmatmul.mubr.msk.f32.vlgmr.msra.gmra.mrb[12].mxu1 %vm717_vm2, %v835_v16  ;;  %1435 = vst.msk [vmem:[#allocation11 + $0x28] sm:$0xff] %vm717_vm2, %v835_v16 }
 0x270   :  { %1621 = vmatmul.mubr.msk.f32.vlgmr.msra.gmra.mrb[14].mxu0 %vm717_vm2, %v836_v20  ;;  %1436 = vst.msk [vmem:[#allocation11 + $0x30] sm:$0xff] %vm717_vm2, %v836_v20  ;;  %1624 = vmatpush3.msra.mxu1 %v99_v17 }
 0x271   :  { %1625 = vmatprep.mubr.msk.f32.mxu1 %vm1823_vm0, %v1822_v0  ;;  %v837_v22 = vmul.f32 %v829_v18, %v805_v21 }
 0x273   :  { %1626 = vmatmul.mubr.msk.f32.vlgmr.msra.gmra.mrb[14].mxu1 %vm717_vm2, %v837_v22  ;;  %1437 = vst.msk [vmem:[#allocation11 + $0x38] sm:$0xff] %vm717_vm2, %v837_v22 }
 0x274   :  { %1771 = shalt.err (!%p1768_p8)
}
 0x275   :  { %s1772_s23 = scalar_lea.hbm %s2090_s5, 1024 }
 0x276   :  { %p1773_p9 = scmp.ne.s32.totalorder %s2090_s5, %s1772_s23  ;;  %p1776_p10 = scmp.lt.u32.totalorder %s1772_s23, %s2090_s5 }
 0x278   :  { %p1778_p11 = pnand %p1776_p10, %p1773_p9 }
 0x27a   :  { %1781 = shalt.err (!%p1778_p11)
}
 0x27b   :  { %1461 = dma.vmem_to_hbm [thread:$0]  %s1456_s18, 1024, %s2090_s5, [#allocation12], %s1816_s30, %s1816_s30, %s1817_s6  }
 0x27c   :  { %s1825_s5 = smov [#allocation10]  }
 0x27d   :  { %s1443_s0 = sshll.u32 %s1825_s5, 4  ;;  %s1444_s0 = int_to_ptr.vmem [resolvable:$true] %s1443_s0 }
 0x27e   :  { %s1782_s21 = scalar_lea.vmem %s1444_s0, 1024  ;;  %p1787_p13 = scmp.lt.s32.totalorder %s1444_s0, %s1444_s0 }
 0x27f   :  { %p1783_p12 = scmp.ne.s32.totalorder %s1444_s0, %s1782_s21  ;;  %p1788_p0 = scmp.lt.s32.totalorder %s1782_s21, %s1782_s21 }
 0x281   :  { %p1789_p1 = por %p1788_p0, %p1787_p13 }
 0x283   :  { %p1790_p2 = pnand %p1789_p1, %p1783_p12 }
 0x336   :  { %v907_v0 = vpop.f32.mrb[8].mxu0 }
 0x337   :  { %1422 = vst.msk [vmem:[#allocation10] sm:$0xff] %vm100_vm1, %v907_v0  ;;  %v1592_v23 = vpop.f32.mrb[9].mxu0 }
 0x33a   :  { %v980_v24 = vpop.f32.mrb[8].mxu1 }
 0x33b   :  { %1423 = vst.msk [vmem:[#allocation10 + $0x8] sm:$0xff] %vm100_vm1, %v980_v24  ;;  %v1053_v25 = vpop.f32.mrb[10].mxu0  ;;  %v1597_v26 = vpop.f32.mrb[9].mxu1 }
 0x33c   :  { %1424 = vst.msk [vmem:[#allocation10 + $0x10] sm:$0xff] %vm100_vm1, %v1053_v25  ;;  %v1602_v27 = vpop.f32.mrb[11].mxu0 }
 0x33e   :  { %v1126_v28 = vpop.f32.mrb[10].mxu1 }
 0x33f   :  { %1425 = vst.msk [vmem:[#allocation10 + $0x18] sm:$0xff] %vm100_vm1, %v1126_v28  ;;  %v1199_v29 = vpop.f32.mrb[12].mxu0  ;;  %v1607_v30 = vpop.f32.mrb[11].mxu1 }
 0x340   :  { %1426 = vst.msk [vmem:[#allocation10 + $0x20] sm:$0xff] %vm100_vm1, %v1199_v29  ;;  %v1612_v31 = vpop.f32.mrb[13].mxu0 }
 0x342   :  { %v1272_v32 = vpop.f32.mrb[12].mxu1 }
 0x343   :  { %1427 = vst.msk [vmem:[#allocation10 + $0x28] sm:$0xff] %vm100_vm1, %v1272_v32  ;;  %v1345_v33 = vpop.f32.mrb[14].mxu0  ;;  %v1617_v34 = vpop.f32.mrb[13].mxu1 }
 0x344   :  { %1428 = vst.msk [vmem:[#allocation10 + $0x30] sm:$0xff] %vm100_vm1, %v1345_v33  ;;  %v1622_v35 = vpop.f32.mrb[15].mxu0 }
 0x346   :  { %v1418_v36 = vpop.f32.mrb[14].mxu1 }
 0x347   :  { %1429 = vst.msk [vmem:[#allocation10 + $0x38] sm:$0xff] %vm100_vm1, %v1418_v36  ;;  %v1627_v37 = vpop.f32.mrb[15].mxu1 }
 0x348   :  { %1793 = shalt.err (!%p1790_p2)
}
 0x349   :  { %s1794_s9 = scalar_lea.hbm %s2089_s4, 1024 }
 0x34a   :  { %p1795_p3 = scmp.ne.s32.totalorder %s2089_s4, %s1794_s9  ;;  %p1798_p4 = scmp.lt.u32.totalorder %s1794_s9, %s2089_s4 }
 0x34c   :  { %p1800_p5 = pnand %p1798_p4, %p1795_p3 }
 0x34e   :  { %1803 = shalt.err (!%p1800_p5)
}
 0x34f   :  { %1449 = dma.vmem_to_hbm [thread:$0]  %s1444_s0, 1024, %s2089_s4, [#allocation4], %s1816_s30, %s1816_s30, %s1817_s6  }
 0x350   :  { %1810 = dma.done.wait [#allocation4], 1024  }
 0x351   :  { %1811 = vsyncadd [#allocation4], 4294966272 }
 0x352   :  { %1812 = dma.done.wait [#allocation12], 1024  }
 0x353   :  { %1813 = vsyncadd [#allocation12], 4294966272 }
 0x354   :  { %1468 = vsyncpa [#allocation3], 1 }
 0x355   :  { %1469 = vsyncpa [#allocation6], 1 }
 0x356   :  { %1470 = vsyncpa [#allocation9], 1 }
 0x357   :  { %1471 = vsyncpa [#allocation4], 1 }
 0x358   :  { %1472 = vsyncpa [#allocation12], 1 }

</bundles_post_ra>
